<compile_context>
chip_gen: v5e
topology: v5e:2x2
jax: 0.10.0
libtpu: 0.0.40
codegen_flags: <defaults>
</compile_context>

<pallas_src>
import functools

import jax
import jax.numpy as jnp
from jax.experimental import pallas as pl
from jax.experimental.pallas import tpu as pltpu


def _round_up(x, m):
    return ((x + m - 1) // m) * m


def _cdiv(a, b):
    return -(-a // b)


def _discriminator_kernel(x_ref, w1t_ref, b1_ref, w2_ref, b2_ref, o_ref):
    # Layer 1 on the MXU in natural layout: h = x @ W1^T (bf16 operands, f32 acc).
    # x is cast f32 -> bf16 in VMEM (VPU, hidden under the x DMA).
    x_bf = x_ref[...].astype(jnp.bfloat16)                     # (tm, img_dim)
    h = jnp.dot(x_bf, w1t_ref[...],
                preferred_element_type=jnp.float32)            # (tm, hidden) f32
    h = h + b1_ref[...]                                        # + (1, hidden) bias
    h = jnp.where(h > 0, h, 0.01 * h)                          # LeakyReLU(0.01)

    # Layer 2 (out_features == 1): VPU multiply + cross-lane reduction (XLU)
    # instead of an N=1 MXU matmul.
    z = jnp.sum(h * w2_ref[...], axis=1, keepdims=True) + b2_ref[...]   # (tm, 1)
    o_ref[...] = (1.0 / (1.0 + jnp.exp(-z))).astype(o_ref.dtype)        # Sigmoid


@functools.partial(jax.jit, static_argnames=("block_m",))
def discriminator_forward(x, w1, b1, w2, b2, *, block_m=2048):
    """x: (B, img_dim); w1: (hidden, img_dim); b1: (hidden,);
       w2: (1, hidden);  b2: (1,).  Returns (B, 1) — same as the PyTorch module."""
    B, img_dim = x.shape
    hidden = w1.shape[0]

    # Batch tile: sublane-aligned (multiple of 8); ragged last block is handled by
    # Pallas (partial reads / dropped out-of-bounds stores), so B is never padded.
    tm = min(block_m, _round_up(B, 8))

    # v7x megacore: make sure there are >= 2 grid steps whenever that still leaves
    # a reasonably sized tile (>= 256 rows), so both TensorCores get work.
    if _cdiv(B, tm) < 2:
        half = _round_up(_cdiv(B, 2), 128)
        if half >= 256:
            tm = min(tm, half)
    grid_m = _cdiv(B, tm)

    # Only the tiny weights/biases are reshaped/cast in the wrapper; x goes straight
    # into the kernel (no extra HBM pass over the big operand).
    w1t = w1.T.astype(jnp.bfloat16)                     # (img_dim, hidden) MXU-natural
    b1_c = b1.astype(jnp.float32).reshape(1, hidden)
    w2_c = w2.astype(jnp.float32).reshape(1, hidden)
    b2_c = b2.astype(jnp.float32).reshape(1, 1)

    out = pl.pallas_call(
        _discriminator_kernel,
        out_shape=jax.ShapeDtypeStruct((B, 1), jnp.float32),
        grid=(grid_m,),
        in_specs=[
            pl.BlockSpec((tm, img_dim), lambda i: (i, 0)),       # x tile (pipelined)
            pl.BlockSpec((img_dim, hidden), lambda i: (0, 0)),   # W1^T: resident
            pl.BlockSpec((1, hidden), lambda i: (0, 0)),         # b1: resident
            pl.BlockSpec((1, hidden), lambda i: (0, 0)),         # w2 row: resident
            pl.BlockSpec((1, 1), lambda i: (0, 0)),              # b2: resident
        ],
        out_specs=pl.BlockSpec((tm, 1), lambda i: (i, 0)),
        compiler_params=pltpu.CompilerParams(
            dimension_semantics=("parallel",),       # megacore-shard the batch
            vmem_limit_bytes=32 * 1024 * 1024,       # fits tm=2048 f32 double-buffered
        ),
    )(x, w1t, b1_c, w2_c, b2_c)

    return out


def init_discriminator_params(key, img_dim=784, hidden_dim=128):
    """Deterministic init mimicking nn.Linear's default U(-1/sqrt(fan_in), 1/sqrt(fan_in))."""
    k1, k2, k3, k4 = jax.random.split(key, 4)
    bound1 = 1.0 / jnp.sqrt(jnp.float32(img_dim))
    bound2 = 1.0 / jnp.sqrt(jnp.float32(hidden_dim))
    w1 = jax.random.uniform(k1, (hidden_dim, img_dim), jnp.float32, -bound1, bound1)
    b1 = jax.random.uniform(k2, (hidden_dim,), jnp.float32, -bound1, bound1)
    w2 = jax.random.uniform(k3, (1, hidden_dim), jnp.float32, -bound2, bound2)
    b2 = jax.random.uniform(k4, (1,), jnp.float32, -bound2, bound2)
    return w1, b1, w2, b2


def _reference_checks(x, w1, b1, w2, b2, out):
    # Reference 1: pure-JAX with the same bf16 matmul operands (checks kernel math).
    h_bf = jnp.dot(x.astype(jnp.bfloat16), w1.astype(jnp.bfloat16).T,
                   preferred_element_type=jnp.float32) + b1
    h_bf = jnp.where(h_bf > 0, h_bf, 0.01 * h_bf)
    ref_bf16 = jax.nn.sigmoid(h_bf @ w2.T + b2)
    assert jnp.allclose(out, ref_bf16, atol=5e-4, rtol=5e-4), \
        float(jnp.max(jnp.abs(out - ref_bf16)))

    # Reference 2: full-f32 PyTorch semantics (checks bf16 quantization is benign).
    h32 = x @ w1.T + b1
    h32 = jnp.where(h32 > 0, h32, 0.01 * h32)
    ref_f32 = jax.nn.sigmoid(h32 @ w2.T + b2)
    assert jnp.allclose(out, ref_f32, atol=1e-2), \
        float(jnp.max(jnp.abs(out - ref_f32)))


if __name__ == "__main__":
    key = jax.random.PRNGKey(0)
    k_params, k_x = jax.random.split(key)

    img_dim, hidden_dim = 784, 128
    w1, b1, w2, b2 = init_discriminator_params(k_params, img_dim, hidden_dim)

    # Small aligned batch + a ragged batch (exercises the partial last block).
    for batch in (8, 130):
        x = jax.random.normal(jax.random.fold_in(k_x, batch), (batch, img_dim),
                              jnp.float32)
        out = discriminator_forward(x, w1, b1, w2, b2)
        out = jax.block_until_ready(out)
        assert out.shape == (batch, 1)
        _reference_checks(x, w1, b1, w2, b2, out)

    print("KERNEL_OK")
</pallas_src>

<mosaic_0001>
module attributes {stable_mosaic.version = 11 : i64} {
  func.func @_discriminator_kernel(%arg0: i32, %arg1: memref<8x784xf32, #tpu.memory_space<vmem>>, %arg2: memref<784x128xbf16, #tpu.memory_space<vmem>>, %arg3: memref<1x128xf32, #tpu.memory_space<vmem>>, %arg4: memref<1x128xf32, #tpu.memory_space<vmem>>, %arg5: memref<1x1xf32, #tpu.memory_space<vmem>>, %arg6: memref<8x1xf32, #tpu.memory_space<vmem>>) attributes {dimension_semantics = [#tpu.dimension_semantics<parallel>], iteration_bounds = array<i64: 1>, scalar_prefetch = 0 : i64, scratch_operands = 0 : i64, tpu.core_type = #tpu.core_type<tc>, window_params = [{transform_indices = @transform_0, window_bounds = array<i64: 8, 784>}, {pipeline_mode = #tpu.pipeline_mode<synchronous>, transform_indices = @transform_1, window_bounds = array<i64: 784, 128>}, {pipeline_mode = #tpu.pipeline_mode<synchronous>, transform_indices = @transform_2, window_bounds = array<i64: 1, 128>}, {pipeline_mode = #tpu.pipeline_mode<synchronous>, transform_indices = @transform_3, window_bounds = array<i64: 1, 128>}, {pipeline_mode = #tpu.pipeline_mode<synchronous>, transform_indices = @transform_4, window_bounds = array<i64: 1, 1>}, {transform_indices = @transform_5, window_bounds = array<i64: 8, 1>}]} {
    %c0 = arith.constant 0 : index
    %c0_0 = arith.constant 0 : index
    %0 = vector.load %arg1[%c0, %c0_0] : memref<8x784xf32, #tpu.memory_space<vmem>>, vector<8x784xf32>
    %1 = arith.truncf %0 : vector<8x784xf32> to vector<8x784xbf16>
    %c0_1 = arith.constant 0 : index
    %c0_2 = arith.constant 0 : index
    %2 = vector.load %arg2[%c0_1, %c0_2] : memref<784x128xbf16, #tpu.memory_space<vmem>>, vector<784x128xbf16>
    %cst = arith.constant dense<0.000000e+00> : vector<8x128xf32>
    %3 = tpu.matmul %1, %2, %cst {dimension_numbers = #tpu.dot_dimension_numbers<[1], [0], [0], [1], [0, 0, 1, 1], [], []>} : vector<8x784xbf16>, vector<784x128xbf16>, vector<8x128xf32> -> vector<8x128xf32>
    %c0_3 = arith.constant 0 : index
    %c0_4 = arith.constant 0 : index
    %4 = vector.load %arg3[%c0_3, %c0_4] : memref<1x128xf32, #tpu.memory_space<vmem>>, vector<1x128xf32>
    %5 = vector.broadcast %4 : vector<1x128xf32> to vector<8x128xf32>
    %6 = arith.addf %3, %5 : vector<8x128xf32>
    %cst_5 = arith.constant 0.000000e+00 : f32
    %7 = vector.broadcast %cst_5 : f32 to vector<8x128xf32>
    %8 = arith.cmpf ogt, %6, %7 : vector<8x128xf32>
    %cst_6 = arith.constant 0.00999999977 : f32
    %9 = vector.broadcast %cst_6 : f32 to vector<8x128xf32>
    %10 = arith.mulf %9, %6 : vector<8x128xf32>
    %11 = arith.select %8, %6, %10 : vector<8x128xi1>, vector<8x128xf32>
    %c0_7 = arith.constant 0 : index
    %c0_8 = arith.constant 0 : index
    %12 = vector.load %arg4[%c0_7, %c0_8] : memref<1x128xf32, #tpu.memory_space<vmem>>, vector<1x128xf32>
    %13 = vector.broadcast %12 : vector<1x128xf32> to vector<8x128xf32>
    %14 = arith.mulf %11, %13 : vector<8x128xf32>
    %cst_9 = arith.constant dense<0.000000e+00> : vector<8xf32>
    %15 = vector.multi_reduction <add>, %14, %cst_9 [1] : vector<8x128xf32> to vector<8xf32>
    %16 = vector.shape_cast %15 : vector<8xf32> to vector<8x1xf32>
    %c0_10 = arith.constant 0 : index
    %c0_11 = arith.constant 0 : index
    %17 = vector.load %arg5[%c0_10, %c0_11] : memref<1x1xf32, #tpu.memory_space<vmem>>, vector<1x1xf32>
    %18 = vector.broadcast %17 : vector<1x1xf32> to vector<8x1xf32>
    %19 = arith.addf %16, %18 : vector<8x1xf32>
    %cst_12 = arith.constant 0.000000e+00 : f32
    %20 = vector.broadcast %cst_12 : f32 to vector<8x1xf32>
    %21 = arith.subf %20, %19 : vector<8x1xf32>
    %22 = math.exp %21 : vector<8x1xf32>
    %cst_13 = arith.constant 1.000000e+00 : f32
    %23 = vector.broadcast %cst_13 : f32 to vector<8x1xf32>
    %24 = arith.addf %23, %22 : vector<8x1xf32>
    %cst_14 = arith.constant 1.000000e+00 : f32
    %25 = vector.broadcast %cst_14 : f32 to vector<8x1xf32>
    %26 = arith.divf %25, %24 : vector<8x1xf32>
    %c0_15 = arith.constant 0 : index
    %c0_16 = arith.constant 0 : index
    %27 = vector.load %arg6[%c0_15, %c0_16] : memref<8x1xf32, #tpu.memory_space<vmem>>, vector<8x1xf32>
    tpu.vector_store %arg6[%c0_15, %c0_16], %26 {strides = array<i32>} : memref<8x1xf32, #tpu.memory_space<vmem>>, vector<8x1xf32>,
    return
  }
  func.func @transform_0(%arg0: i32) -> (i32, i32) {
    %c0_i32 = arith.constant 0 : i32
    %c0_i32_0 = arith.constant 0 : i32
    return %arg0, %c0_i32 : i32, i32
  }
  func.func @transform_1(%arg0: i32) -> (i32, i32) {
    %c0_i32 = arith.constant 0 : i32
    %c0_i32_0 = arith.constant 0 : i32
    %c0_i32_1 = arith.constant 0 : i32
    return %c0_i32, %c0_i32_0 : i32, i32
  }
  func.func @transform_2(%arg0: i32) -> (i32, i32) {
    %c0_i32 = arith.constant 0 : i32
    %c0_i32_0 = arith.constant 0 : i32
    %c0_i32_1 = arith.constant 0 : i32
    return %c0_i32, %c0_i32_0 : i32, i32
  }
  func.func @transform_3(%arg0: i32) -> (i32, i32) {
    %c0_i32 = arith.constant 0 : i32
    %c0_i32_0 = arith.constant 0 : i32
    %c0_i32_1 = arith.constant 0 : i32
    return %c0_i32, %c0_i32_0 : i32, i32
  }
  func.func @transform_4(%arg0: i32) -> (i32, i32) {
    %c0_i32 = arith.constant 0 : i32
    %c0_i32_0 = arith.constant 0 : i32
    %c0_i32_1 = arith.constant 0 : i32
    return %c0_i32, %c0_i32_0 : i32, i32
  }
  func.func @transform_5(%arg0: i32) -> (i32, i32) {
    %c0_i32 = arith.constant 0 : i32
    %c0_i32_0 = arith.constant 0 : i32
    return %arg0, %c0_i32 : i32, i32
  }
}

</mosaic_0001>

<bundles_post_ra>
// kernel: discriminator_forward.1
= control target key start
LH: loop header
LB: loop body
LE: loop exit
PB: predicated region body
PF: predicated region fallthrough
CT: control target
= control target key end

     0   :  { %vm433_vm0 = vcmask 130048   ;;  %vm562_vm5 = vcmask 7168   ;;  %s1031_s1 = inlined_call_operand.vmem [shape: bf16[784,128], index: 1, kind: input, shape index: {}]   ;;  %s1032_s2 = inlined_call_operand.vmem [shape: f32[1,128], index: 2, kind: input, shape index: {}]   ;;  %s1033_s0 = inlined_call_operand.vmem [shape: f32[8,784], index: 0, kind: input, shape index: {}]   ;;  %s1034_s3 = inlined_call_operand.vmem [shape: f32[1,128], index: 3, kind: input, shape index: {}]   ;;  %s1035_s4 = inlined_call_operand.<no memory space> [shape: f32[1,1], index: 4, kind: input, shape index: {}]   ;;  %s1036_s5 = inlined_call_operand.vmem [shape: f32[8,1], index: 5, kind: output, shape index: {}]  }
   0x1   :  { %v772_v0 = vld [vmem:[%s1031_s1 + $0x38] sm:$0xff]  ;;  %v771_v3 = vld [vmem:[%s1031_s1 + $0x30] sm:$0xff]  ;;  %v770_v8 = vld [vmem:[%s1031_s1 + $0x28] sm:$0xff] }
   0x2   :  { %v780_v1 = vld [vmem:[%s1031_s1 + $0x78] sm:$0xff]  ;;  %437 = vmatpush.bf16.msra.mxu0 %v772_v0  ;;  %v779_v4 = vld [vmem:[%s1031_s1 + $0x70] sm:$0xff]  ;;  %v778_v9 = vld [vmem:[%s1031_s1 + $0x68] sm:$0xff] }
   0x3   :  { %v788_v2 = vld [vmem:[%s1031_s1 + $0xb8] sm:$0xff]  ;;  %450 = vmatpush.bf16.msra.mxu1 %v780_v1  ;;  %v787_v5 = vld [vmem:[%s1031_s1 + $0xb0] sm:$0xff]  ;;  %v786_v10 = vld [vmem:[%s1031_s1 + $0xa8] sm:$0xff] }
   0x4   :  { %463 = vmatpush.bf16.msra.mxu2 %v788_v2  ;;  %v796_v6 = vld [vmem:[%s1031_s1 + $0xf8] sm:$0xff]  ;;  %v795_v7 = vld [vmem:[%s1031_s1 + $0xf0] sm:$0xff]  ;;  %v794_v11 = vld [vmem:[%s1031_s1 + $0xe8] sm:$0xff] }
   0x5   :  { %476 = vmatpush.bf16.msra.mxu3 %v796_v6  ;;  %v769_v12 = vld [vmem:[%s1031_s1 + $0x20] sm:$0xff]  ;;  %v768_v16 = vld [vmem:[%s1031_s1 + $0x18] sm:$0xff]  ;;  %v767_v20 = vld [vmem:[%s1031_s1 + $0x10] sm:$0xff] }
   0x6   :  { %438 = vmatpush.bf16.msra.mxu0 %v771_v3  ;;  %v777_v13 = vld [vmem:[%s1031_s1 + $0x60] sm:$0xff]  ;;  %v776_v17 = vld [vmem:[%s1031_s1 + $0x58] sm:$0xff]  ;;  %v775_v21 = vld [vmem:[%s1031_s1 + $0x50] sm:$0xff] }
   0x7   :  { %451 = vmatpush.bf16.msra.mxu1 %v779_v4  ;;  %v785_v14 = vld [vmem:[%s1031_s1 + $0xa0] sm:$0xff]  ;;  %v784_v18 = vld [vmem:[%s1031_s1 + $0x98] sm:$0xff]  ;;  %v783_v22 = vld [vmem:[%s1031_s1 + $0x90] sm:$0xff]  ;;  %v10_v4 = vstv %s1035_s4 }
   0x8   :  { %464 = vmatpush.bf16.msra.mxu2 %v787_v5  ;;  %v793_v15 = vld [vmem:[%s1031_s1 + $0xe0] sm:$0xff]  ;;  %v792_v19 = vld [vmem:[%s1031_s1 + $0xd8] sm:$0xff]  ;;  %v791_v23 = vld [vmem:[%s1031_s1 + $0xd0] sm:$0xff]  ;;  %11 = vst [vmem:[#allocation2] sm:$0x1] %v10_v4 }
   0x9   :  { %477 = vmatpush.bf16.msra.mxu3 %v795_v7  ;;  %v766_v24 = vld [vmem:[%s1031_s1 + $0x8] sm:$0xff]  ;;  %v765_v27 = vld [vmem:[%s1031_s1] sm:$0xff]  ;;  %v804_v32 = vld [vmem:[%s1031_s1 + $0x138] sm:$0xff] }
   0xa   :  { %439 = vmatpush.bf16.msra.mxu0 %v770_v8  ;;  %v774_v25 = vld [vmem:[%s1031_s1 + $0x48] sm:$0xff]  ;;  %v773_v29 = vld [vmem:[%s1031_s1 + $0x40] sm:$0xff]  ;;  %v812_v33 = vld [vmem:[%s1031_s1 + $0x178] sm:$0xff] }
   0xb   :  { %452 = vmatpush.bf16.msra.mxu1 %v778_v9  ;;  %v782_v26 = vld [vmem:[%s1031_s1 + $0x88] sm:$0xff]  ;;  %v23_v30 = vld [vmem:[%s1033_s0] sm:$0xff]  ;;  %v25_v35 = vld [vmem:[%s1033_s0 + $0x10] sm:$0xff] }
   0xc   :  { %465 = vmatpush.bf16.msra.mxu2 %v786_v10  ;;  %v790_v28 = vld [vmem:[%s1031_s1 + $0xc8] sm:$0xff]  ;;  %v781_v34 = vld [vmem:[%s1031_s1 + $0x80] sm:$0xff]  ;;  %v30_v36 = vpack.c.bf16 %v23_v30, %v23_v30  ;;  %v26_v40 = vld [vmem:[%s1033_s0 + $0x18] sm:$0xff]  ;;  %v32_v43 = vpack.c.bf16 %v25_v35, %v25_v35 }
   0xd   :  { %478 = vmatpush.bf16.msra.mxu3 %v794_v11  ;;  %v24_v31 = vld [vmem:[%s1033_s0 + $0x8] sm:$0xff]  ;;  %v789_v38 = vld [vmem:[%s1031_s1 + $0xc0] sm:$0xff]  ;;  %v803_v41 = vld [vmem:[%s1031_s1 + $0x130] sm:$0xff]  ;;  %v33_v44 = vpack.c.bf16 %v26_v40, %v26_v40 }
   0xe   :  { %440 = vmatpush.bf16.msra.mxu0 %v769_v12  ;;  %v31_v37 = vpack.c.bf16 %v24_v31, %v24_v31  ;;  %v813_v39 = vld [vmem:[%s1031_s1 + $0x180] sm:$0xff]  ;;  %v811_v42 = vld [vmem:[%s1031_s1 + $0x170] sm:$0xff]  ;;  %v802_v45 = vld [vmem:[%s1031_s1 + $0x128] sm:$0xff] }
   0xf   :  { %453 = vmatpush.bf16.msra.mxu1 %v777_v13  ;;  %v810_v46 = vld [vmem:[%s1031_s1 + $0x168] sm:$0xff]  ;;  %v801_v47 = vld [vmem:[%s1031_s1 + $0x120] sm:$0xff]  ;;  %v800_v49 = vld [vmem:[%s1031_s1 + $0x118] sm:$0xff] }
  0x10   :  { %466 = vmatpush.bf16.msra.mxu2 %v785_v14  ;;  %v809_v48 = vld [vmem:[%s1031_s1 + $0x160] sm:$0xff]  ;;  %v808_v50 = vld [vmem:[%s1031_s1 + $0x158] sm:$0xff]  ;;  %v29_v51 = vld [vmem:[%s1033_s0 + $0x30] sm:$0xff] }
  0x11   :  { %479 = vmatpush.bf16.msra.mxu3 %v793_v15  ;;  %v799_v52 = vld [vmem:[%s1031_s1 + $0x110] sm:$0xff]  ;;  %v36_v54 = vpack.c.bf16 %v29_v51, %v29_v51  ;;  %v798_v55 = vld [vmem:[%s1031_s1 + $0x108] sm:$0xff]  ;;  %v797_v57 = vld [vmem:[%s1031_s1 + $0x100] sm:$0xff] }
  0x12   :  { %441 = vmatpush.bf16.msra.mxu0 %v768_v16  ;;  %v807_v53 = vld [vmem:[%s1031_s1 + $0x150] sm:$0xff]  ;;  %v806_v56 = vld [vmem:[%s1031_s1 + $0x148] sm:$0xff]  ;;  %v805_v58 = vld [vmem:[%s1031_s1 + $0x140] sm:$0xff] }
  0x13   :  { %454 = vmatpush.bf16.msra.mxu1 %v776_v17  ;;  %v27_v59 = vld [vmem:[%s1033_s0 + $0x20] sm:$0xff]  ;;  %v28_v60 = vld [vmem:[%s1033_s0 + $0x28] sm:$0xff] }
  0x14   :  { %467 = vmatpush.bf16.msra.mxu2 %v784_v18  ;;  %v34_v61 = vpack.c.bf16 %v27_v59, %v27_v59  ;;  %v35_v62 = vpack.c.bf16 %v28_v60, %v28_v60  ;;  %v814_v6 = vld [vmem:[%s1032_s2] ss:$0 sm:$0xff] }
  0x15   :  { %480 = vmatpush.bf16.msra.mxu3 %v792_v19 }
  0x16   :  { %442 = vmatpush.bf16.msra.mxu0 %v767_v20  ;;  %v815_v20 = vld [vmem:[%s1034_s3] ss:$0 sm:$0xff] }
  0x17   :  { %455 = vmatpush.bf16.msra.mxu1 %v775_v21 }
  0x18   :  { %468 = vmatpush.bf16.msra.mxu2 %v783_v22 }
  0x19   :  { %481 = vmatpush.bf16.msra.mxu3 %v791_v23 }
  0x1a   :  { %443 = vmatpush.bf16.msra.mxu0 %v766_v24 }
  0x1b   :  { %456 = vmatpush.bf16.msra.mxu1 %v774_v25 }
  0x1c   :  { %469 = vmatpush.bf16.msra.mxu2 %v782_v26  ;;  %v816_v26 = vld [vmem:[#allocation2] ss:$0 sm:$0xff] }
  0x1d   :  { %482 = vmatpush.bf16.msra.mxu3 %v790_v28 }
  0x1e   :  { %444 = vmatpush.bf16.msra.mxu0 %v765_v27 }
  0x1f   :  { %457 = vmatpush.bf16.msra.mxu1 %v773_v29 }
  0x20   :  { %470 = vmatpush.bf16.msra.mxu2 %v781_v34 }
  0x21   :  { %445 = vmatmul.bf16.vlgmr.msra.gmra.mxu0 %v30_v36  ;;  %483 = vmatpush.bf16.msra.mxu3 %v789_v38 }
  0x22   :  { %489 = vmatpush.bf16.msrb.mxu0 %v804_v32  ;;  %458 = vmatmul.bf16.vlgmr.msra.gmra.mxu1 %v31_v37 }
  0x23   :  { %502 = vmatpush.bf16.msrb.mxu1 %v812_v33  ;;  %471 = vmatmul.bf16.vlgmr.msra.gmra.mxu2 %v32_v43 }
  0x24   :  { %522 = vmatpush.bf16.msrb.mxu2 %v813_v39  ;;  %484 = vmatmul.bf16.vlgmr.msra.gmra.mxu3 %v33_v44 }
  0x26   :  { %490 = vmatpush.bf16.msrb.mxu0 %v803_v41 }
  0x27   :  { %503 = vmatpush.bf16.msrb.mxu1 %v811_v42 }
  0x2a   :  { %491 = vmatpush.bf16.msrb.mxu0 %v802_v45 }
  0x2b   :  { %504 = vmatpush.bf16.msrb.mxu1 %v810_v46 }
  0x2e   :  { %492 = vmatpush.bf16.msrb.mxu0 %v801_v47 }
  0x2f   :  { %505 = vmatpush.bf16.msrb.mxu1 %v809_v48 }
  0x32   :  { %493 = vmatpush.bf16.msrb.mxu0 %v800_v49 }
  0x33   :  { %506 = vmatpush.bf16.msrb.mxu1 %v808_v50  ;;  %764 = vmatmul.msk.bf16.vlgmr.msrb.gmra.mxu2 %vm433_vm0, %v36_v54 }
  0x36   :  { %494 = vmatpush.bf16.msrb.mxu0 %v799_v52 }
  0x37   :  { %507 = vmatpush.bf16.msrb.mxu1 %v807_v53 }
  0x3a   :  { %495 = vmatpush.bf16.msrb.mxu0 %v798_v55 }
  0x3b   :  { %508 = vmatpush.bf16.msrb.mxu1 %v806_v56 }
  0x3e   :  { %496 = vmatpush.bf16.msrb.mxu0 %v797_v57 }
  0x3f   :  { %509 = vmatpush.bf16.msrb.mxu1 %v805_v58 }
  0x41   :  { %497 = vmatmul.bf16.vlgmr.msrb.gmra.mxu0 %v34_v61 }
  0x42   :  { %510 = vmatmul.bf16.vlgmr.msrb.gmra.mxu1 %v35_v62 }
  0x9e   :  { %v446_v63 = vpop.f32.mrf.mxu0 }
  0x9f   :  { %v459_v0 = vpop.f32.mrf.mxu1  ;;  %v447_v7 = vadd.f32 %v814_v6, %v446_v63 }
  0xa1   :  { %v460_v10 = vadd.f32 %v459_v0, %v447_v7 }
  0xa6   :  { %v448_v1 = vpop.f32.mrf.mxu0  ;;  %v472_v3 = vpop.f32.mrf.mxu2 }
  0xa7   :  { %v461_v2 = vpop.f32.mrf.mxu1  ;;  %v485_v5 = vpop.f32.mrf.mxu3  ;;  %v473_v11 = vadd.f32 %v472_v3, %v460_v10 }
  0xa9   :  { %v486_v13 = vadd.f32 %v485_v5, %v473_v11 }
  0xae   :  { %v474_v8 = vpop.f32.mrf.mxu2 }
  0xaf   :  { %v487_v9 = vpop.f32.mrf.mxu3 }
  0xb6   :  { %v524_v12 = vpop.f32.mrf.mxu2 }
  0xbe   :  { %v498_v14 = vpop.f32.mrf.mxu0  ;;  %v526_v18 = vpop.f32.mrf.mxu2 }
  0xbf   :  { %v511_v15 = vpop.f32.mrf.mxu1  ;;  %v499_v16 = vadd.f32 %v498_v14, %v486_v13 }
  0xc1   :  { %v512_v17 = vadd.f32 %v511_v15, %v499_v16 }
  0xc3   :  { %v525_v19 = vadd.f32 %v524_v12, %v512_v17 }
  0xc5   :  { %vm528_vm1 = vcmp.gt.f32.partialorder %v525_v19, 0.0  ;;  %v529_v21 = vmul.f32 0.01, %v525_v19 }
  0xc6   :  { %v500_v22 = vpop.f32.mrf.mxu0 }
  0xc7   :  { %v513_v23 = vpop.f32.mrf.mxu1  ;;  %v530_v24 = vsel %vm528_vm1, %v525_v19, %v529_v21 }
  0xc8   :  { %v535_v25 = vmul.f32 %v815_v20, %v530_v24 }
  0xca   :  { %536 = vadd.xlane.f32.xlu0 %v535_v25 }
 0x13d   :  { %v537_v27 = vpop.xlane.xlu0 %536 }
 0x13e   :  { %v542_v28 = vadd.f32 %v816_v26, %v537_v27 }
 0x140   :  { %v543_v29 = vsub.f32 0.0, %v542_v28 }
 0x142   :  { %v544_v30 = vmul.f32 1.442695, %v543_v29 }
 0x144   :  { %817 = vpow2.f32 %v544_v30 }
 0x14a   :  { %v818_v31 = vpop.eup %817 }
 0x14b   :  { %v546_v32 = vadd.f32 1.0, %v818_v31 }
 0x14d   :  { %819 = vrcp.f32 %v546_v32  ;;  %v558_v36 = vand.u32 2147483648, %v546_v32  ;;  %v556_v38 = vand.u32 2147483647, %v546_v32  ;;  %vm552_vm3 = vweird.f32 %v546_v32 }
 0x14f   :  { %v559_v40 = vor.u32 1.1754944e-38, %v558_v36  ;;  %vm557_vm6 = vcmp.eq.f32.partialorder %v556_v38, 8.507059e+37 }
 0x153   :  { %v820_v33 = vpop.eup %819 }
 0x154   :  { %v548_v34 = vmul.f32 %v820_v33, %v546_v32  ;;  %vm553_vm2 = vweird.f32 %v820_v33 }
 0x155   :  { %vm554_vm4 = vmor %vm552_vm3, %vm553_vm2 }
 0x156   :  { %v549_v35 = vsub.f32 1.0, %v548_v34 }
 0x158   :  { %v550_v37 = vmul.f32 %v820_v33, %v549_v35 }
 0x15a   :  { %v551_v39 = vadd.f32 %v820_v33, %v550_v37 }
 0x15c   :  { %v555_v41 = vsel %vm554_vm4, %v820_v33, %v551_v39 }
 0x15d   :  { %v560_v42 = vsel %vm557_vm6, %v559_v40, %v555_v41 }
 0x15e   :  { %563 = vst.msk [vmem:[%s1036_s5] sm:$0xff] %vm562_vm5, %v560_v42 }

</bundles_post_ra>
